<compile_context>
chip_gen: v5e
topology: v5e:2x2
jax: 0.10.0
libtpu: 0.0.40
codegen_flags: <defaults>
</compile_context>

<pallas_src>
import math

import numpy as np
import jax
import jax.numpy as jnp
from jax.experimental import pallas as pl
from jax.experimental.pallas import tpu as pltpu  # noqa: F401  (not required at this size)


def _fused_attention_kernel(q2_ref, k2t_ref, v2_ref, wqk_ref, wvt_ref,
                            bias_ref, bmask_ref, sel_ref, wo_ref, bo_ref,
                            o_ref):
    # Q/K projections + scale folded into a single (D,D) weight in the wrapper.
    qk = jnp.dot(q2_ref[...], wqk_ref[...], preferred_element_type=jnp.float32)    # (R, D)
    # V projection with the weight pre-tiled across the H head blocks -> (R, E).
    vt = jnp.dot(v2_ref[...], wvt_ref[...], preferred_element_type=jnp.float32)    # (R, E)

    # Across-heads energy at each (batch, position): K arrives pre-transposed
    # (D, R) so this is a plain MXU feed; the block mask is an additive bias.
    energy = jnp.dot(qk, k2t_ref[...],
                     preferred_element_type=jnp.float32) + bias_ref[...]            # (R, R)

    # Softmax over the H valid columns of every row (masked entries -> exactly 0).
    e_max = jnp.max(energy, axis=-1, keepdims=True)
    p = jnp.exp(energy - e_max)
    inv = pl.reciprocal(jnp.sum(p, axis=-1, keepdims=True), approx=True)            # EUP
    attn = p * inv

    # Attention output, already replicated across the H head blocks.
    out_t = jnp.dot(attn, vt, preferred_element_type=jnp.float32)                   # (R, E)

    # Fused raw (N,H,L,D) -> (N*L, E) re-flatten + fc_out:
    #   bmask keeps, per row, only the head block it lands in after the reshape;
    #   sel sums the H rows that belong to each output row.
    u = jnp.dot(out_t * bmask_ref[...], wo_ref[...],
                preferred_element_type=jnp.float32)                                 # (R, E)
    fc = jnp.dot(sel_ref[...], u, preferred_element_type=jnp.float32)               # (M, E)

    o_ref[...] = (fc + bo_ref[...]).astype(o_ref.dtype)


def _shape_constants(N, L, H, D):
    """Shape-only constants (built on host, constant-folded under jit)."""
    R, M, E = N * L * H, N * L, H * D
    r = np.arange(R)
    n = r // (L * H)
    p = (r % (L * H)) // H
    i = r % H

    # Additive attention mask: rows/cols sharing the same (batch, position).
    blk = r // H
    bias = np.where(blk[:, None] == blk[None, :], 0.0, -1e30).astype(np.float32)

    # Inverse of the raw (N,H,L,D) -> (N,L,H*D) reshape: row r = (n, pos, head)
    # of the attention output lands in output row m, head block j.
    t = n * (H * L) + i * L + p
    m = t // H
    j = t % H
    bmask = np.zeros((R, E), np.float32)
    for d in range(D):
        bmask[r, j * D + d] = 1.0
    sel = np.zeros((M, R), np.float32)
    sel[m, r] = 1.0
    return jnp.asarray(bias), jnp.asarray(bmask), jnp.asarray(sel)


def self_attention_forward(value, key, query, params):
    """Pallas TPU implementation of SelfAttention.forward (single fused kernel)."""
    wq_t, wk_t, wv_t, wo_t, bo = params            # projection weights as (in, out)
    N, L, H, D = query.shape
    E = H * D
    R = N * L * H
    scale = 1.0 / math.sqrt(E)

    bias, bmask, sel = _shape_constants(N, L, H, D)

    # Wrapper-side layout prep (tiny, fused into the surrounding jit):
    q2 = query.reshape(R, D)                       # rows in (batch, pos, head) order
    v2 = value.reshape(R, D)
    k2t = key.reshape(R, D).T                      # (D, R): K pre-transposed for energy
    wqk = (wq_t @ wk_t.T) * scale                  # Q & K projections + 1/sqrt(E) folded
    wvt = jnp.tile(wv_t, (1, H))                   # V weight replicated per head block (D, E)

    out = pl.pallas_call(
        _fused_attention_kernel,
        out_shape=jax.ShapeDtypeStruct((N * L, E), jnp.float32),
        # Gridless single invocation: every operand (<100 KiB total) is whole in
        # VMEM and DMA'd exactly once.
        # TODO(synk): for large N*L (or to use v7x's 2nd TensorCore) grid over
        # (n, l) tiles with dimension_semantics=("parallel", ...) — the (R, R)
        # energy buffer grows quadratically with N*L*H.
    )(q2, k2t, v2, wqk, wvt, bias, bmask, sel, wo_t, bo.reshape(1, E))

    return out.reshape(N, L, E)


# ---------------------------------------------------------------------------
# Pure-JAX reference: literal transcription of the PyTorch forward.
# ---------------------------------------------------------------------------
def reference(value, key, query, params):
    wq_t, wk_t, wv_t, wo_t, bo = params
    N, L, H, D = query.shape
    E = H * D
    V = jnp.einsum('nlhd,de->nlhe', value, wv_t)
    K = jnp.einsum('nlhd,de->nlhe', key, wk_t)
    Q = jnp.einsum('nlhd,de->nlhe', query, wq_t)
    Vt = jnp.transpose(V, (0, 2, 1, 3))
    Kt = jnp.transpose(K, (0, 2, 1, 3))
    Qt = jnp.transpose(Q, (0, 2, 1, 3))
    energy = jnp.einsum('nqhd,nkhd->nhqk', Qt, Kt)
    attn = jax.nn.softmax(energy / math.sqrt(E), axis=3)
    out = jnp.einsum('nhql,nlhd->nqhd', attn, Vt)
    out = out.reshape(N, L, E)
    return jnp.einsum('nle,ef->nlf', out, wo_t) + bo


if __name__ == "__main__":
    # embed_size = 32, heads = 4 -> head_dim = 8; batch = 2, seq = 8
    N, L, H, D = 2, 8, 4, 8
    E = H * D

    root = jax.random.PRNGKey(0)
    ks = jax.random.split(root, 8)

    def _linear_init(k, shape, fan_in):
        bound = 1.0 / math.sqrt(fan_in)
        return jax.random.uniform(k, shape, jnp.float32, -bound, bound)

    # Weights stored pre-transposed as (in_features, out_features).
    wq_t = _linear_init(ks[0], (D, D), D)
    wk_t = _linear_init(ks[1], (D, D), D)
    wv_t = _linear_init(ks[2], (D, D), D)
    wo_t = _linear_init(ks[3], (E, E), E)
    bo   = _linear_init(ks[4], (E,), E)
    params = (wq_t, wk_t, wv_t, wo_t, bo)

    value  = jax.random.normal(ks[5], (N, L, H, D), jnp.float32)
    key_in = jax.random.normal(ks[6], (N, L, H, D), jnp.float32)
    query  = jax.random.normal(ks[7], (N, L, H, D), jnp.float32)

    out = jax.jit(self_attention_forward)(value, key_in, query, params)
    out = jax.block_until_ready(out)

    ref = reference(value, key_in, query, params)
    assert out.shape == (N, L, E), out.shape
    assert jnp.allclose(out, ref, rtol=1e-2, atol=1e-2), \
        float(jnp.max(jnp.abs(out - ref)))

    print("KERNEL_OK")
</pallas_src>

<mosaic_0001>
module attributes {stable_mosaic.version = 11 : i64} {
  func.func @_fused_attention_kernel(%arg0: memref<64x8xf32, #tpu.memory_space<vmem>>, %arg1: memref<8x64xf32, #tpu.memory_space<vmem>>, %arg2: memref<64x8xf32, #tpu.memory_space<vmem>>, %arg3: memref<8x8xf32, #tpu.memory_space<vmem>>, %arg4: memref<8x32xf32, #tpu.memory_space<vmem>>, %arg5: memref<64x64xf32, #tpu.memory_space<vmem>>, %arg6: memref<64x32xf32, #tpu.memory_space<vmem>>, %arg7: memref<16x64xf32, #tpu.memory_space<vmem>>, %arg8: memref<32x32xf32, #tpu.memory_space<vmem>>, %arg9: memref<1x32xf32, #tpu.memory_space<vmem>>, %arg10: memref<16x32xf32, #tpu.memory_space<vmem>>) attributes {dimension_semantics = [], scalar_prefetch = 0 : i64, scratch_operands = 0 : i64, tpu.core_type = #tpu.core_type<tc>} {
    %c0 = arith.constant 0 : index
    %c0_0 = arith.constant 0 : index
    %0 = vector.load %arg0[%c0, %c0_0] : memref<64x8xf32, #tpu.memory_space<vmem>>, vector<64x8xf32>
    %c0_1 = arith.constant 0 : index
    %c0_2 = arith.constant 0 : index
    %1 = vector.load %arg3[%c0_1, %c0_2] : memref<8x8xf32, #tpu.memory_space<vmem>>, vector<8x8xf32>
    %cst = arith.constant dense<0.000000e+00> : vector<64x8xf32>
    %2 = tpu.matmul %0, %1, %cst {dimension_numbers = #tpu.dot_dimension_numbers<[1], [0], [0], [1], [0, 0, 1, 1], [], []>} : vector<64x8xf32>, vector<8x8xf32>, vector<64x8xf32> -> vector<64x8xf32>
    %c0_3 = arith.constant 0 : index
    %c0_4 = arith.constant 0 : index
    %3 = vector.load %arg2[%c0_3, %c0_4] : memref<64x8xf32, #tpu.memory_space<vmem>>, vector<64x8xf32>
    %c0_5 = arith.constant 0 : index
    %c0_6 = arith.constant 0 : index
    %4 = vector.load %arg4[%c0_5, %c0_6] : memref<8x32xf32, #tpu.memory_space<vmem>>, vector<8x32xf32>
    %cst_7 = arith.constant dense<0.000000e+00> : vector<64x32xf32>
    %5 = tpu.matmul %3, %4, %cst_7 {dimension_numbers = #tpu.dot_dimension_numbers<[1], [0], [0], [1], [0, 0, 1, 1], [], []>} : vector<64x8xf32>, vector<8x32xf32>, vector<64x32xf32> -> vector<64x32xf32>
    %c0_8 = arith.constant 0 : index
    %c0_9 = arith.constant 0 : index
    %6 = vector.load %arg1[%c0_8, %c0_9] : memref<8x64xf32, #tpu.memory_space<vmem>>, vector<8x64xf32>
    %cst_10 = arith.constant dense<0.000000e+00> : vector<64x64xf32>
    %7 = tpu.matmul %2, %6, %cst_10 {dimension_numbers = #tpu.dot_dimension_numbers<[1], [0], [0], [1], [0, 0, 1, 1], [], []>} : vector<64x8xf32>, vector<8x64xf32>, vector<64x64xf32> -> vector<64x64xf32>
    %c0_11 = arith.constant 0 : index
    %c0_12 = arith.constant 0 : index
    %8 = vector.load %arg5[%c0_11, %c0_12] : memref<64x64xf32, #tpu.memory_space<vmem>>, vector<64x64xf32>
    %9 = arith.addf %7, %8 : vector<64x64xf32>
    %cst_13 = arith.constant dense<0xFF800000> : vector<64xf32>
    %10 = vector.multi_reduction <maximumf>, %9, %cst_13 [1] : vector<64x64xf32> to vector<64xf32>
    %11 = vector.shape_cast %10 : vector<64xf32> to vector<64x1xf32>
    %12 = vector.broadcast %11 : vector<64x1xf32> to vector<64x64xf32>
    %13 = arith.subf %9, %12 : vector<64x64xf32>
    %14 = math.exp %13 : vector<64x64xf32>
    %cst_14 = arith.constant dense<0.000000e+00> : vector<64xf32>
    %15 = vector.multi_reduction <add>, %14, %cst_14 [1] : vector<64x64xf32> to vector<64xf32>
    %16 = vector.shape_cast %15 : vector<64xf32> to vector<64x1xf32>
    %17 = tpu.reciprocal %16 {approx = true} : vector<64x1xf32> -> vector<64x1xf32>
    %18 = vector.broadcast %17 : vector<64x1xf32> to vector<64x64xf32>
    %19 = arith.mulf %14, %18 : vector<64x64xf32>
    %cst_15 = arith.constant dense<0.000000e+00> : vector<64x32xf32>
    %20 = tpu.matmul %19, %5, %cst_15 {dimension_numbers = #tpu.dot_dimension_numbers<[1], [0], [0], [1], [0, 0, 1, 1], [], []>} : vector<64x64xf32>, vector<64x32xf32>, vector<64x32xf32> -> vector<64x32xf32>
    %c0_16 = arith.constant 0 : index
    %c0_17 = arith.constant 0 : index
    %21 = vector.load %arg6[%c0_16, %c0_17] : memref<64x32xf32, #tpu.memory_space<vmem>>, vector<64x32xf32>
    %22 = arith.mulf %20, %21 : vector<64x32xf32>
    %c0_18 = arith.constant 0 : index
    %c0_19 = arith.constant 0 : index
    %23 = vector.load %arg8[%c0_18, %c0_19] : memref<32x32xf32, #tpu.memory_space<vmem>>, vector<32x32xf32>
    %cst_20 = arith.constant dense<0.000000e+00> : vector<64x32xf32>
    %24 = tpu.matmul %22, %23, %cst_20 {dimension_numbers = #tpu.dot_dimension_numbers<[1], [0], [0], [1], [0, 0, 1, 1], [], []>} : vector<64x32xf32>, vector<32x32xf32>, vector<64x32xf32> -> vector<64x32xf32>
    %c0_21 = arith.constant 0 : index
    %c0_22 = arith.constant 0 : index
    %25 = vector.load %arg7[%c0_21, %c0_22] : memref<16x64xf32, #tpu.memory_space<vmem>>, vector<16x64xf32>
    %cst_23 = arith.constant dense<0.000000e+00> : vector<16x32xf32>
    %26 = tpu.matmul %25, %24, %cst_23 {dimension_numbers = #tpu.dot_dimension_numbers<[1], [0], [0], [1], [0, 0, 1, 1], [], []>} : vector<16x64xf32>, vector<64x32xf32>, vector<16x32xf32> -> vector<16x32xf32>
    %c0_24 = arith.constant 0 : index
    %c0_25 = arith.constant 0 : index
    %27 = vector.load %arg9[%c0_24, %c0_25] : memref<1x32xf32, #tpu.memory_space<vmem>>, vector<1x32xf32>
    %28 = vector.broadcast %27 : vector<1x32xf32> to vector<16x32xf32>
    %29 = arith.addf %26, %28 : vector<16x32xf32>
    %c0_26 = arith.constant 0 : index
    %c0_27 = arith.constant 0 : index
    %30 = vector.load %arg10[%c0_26, %c0_27] : memref<16x32xf32, #tpu.memory_space<vmem>>, vector<16x32xf32>
    tpu.vector_store %arg10[%c0_26, %c0_27], %29 {strides = array<i32>} : memref<16x32xf32, #tpu.memory_space<vmem>>, vector<16x32xf32>,
    return
  }
}

</mosaic_0001>

<bundles_post_ra>
// kernel: tile.9
= control target key start
LH: loop header
LB: loop body
LE: loop exit
PB: predicated region body
PF: predicated region fallthrough
CT: control target
= control target key end

     0   :  { %vm36_vm0 = vcmask 1047556   ;;  %s81_s22 = smov 8   ;;  %s82_s23 = smov 16   ;;  %vm38_vm1 = vcmask 64512   ;;  %vm48_vm2 = vcmask 261312   ;;  %vm58_vm3 = vcmask 195712   ;;  %s133_s0 = inlined_call_operand.vmem [shape: f32[8,4,8], index: 0, kind: input, shape index: {}]   ;;  %s134_s1 = inlined_call_operand.vmem [shape: f32[8,32], index: 1, kind: output, shape index: {}]  }
   0x1   :  { %v70_v0 = vld [vmem:[%s133_s0 + $0x1c] sm:$0xf]  ;;  %v71_v1 = vld [vmem:[%s133_s0 + $0x18] sm:$0xf]  ;;  %v72_v2 = vld [vmem:[%s133_s0 + $0x14] sm:$0xf] }
   0x2   :  { %7 = vst [vmem:[#allocation0 + $0x38] sm:$0xf] %v70_v0  ;;  %v73_v3 = vld [vmem:[%s133_s0 + $0x10] sm:$0xf]  ;;  %v74_v4 = vld [vmem:[%s133_s0 + $0xc] sm:$0xf] }
   0x3   :  { %11 = vst [vmem:[#allocation0 + $0x30] sm:$0xf] %v71_v1  ;;  %v75_v5 = vld [vmem:[%s133_s0 + $0x8] sm:$0xf]  ;;  %v76_v6 = vld [vmem:[%s133_s0 + $0x4] sm:$0xf] }
   0x4   :  { %15 = vst [vmem:[#allocation0 + $0x28] sm:$0xf] %v72_v2  ;;  %v32_v7 = vld [vmem:[%s133_s0] sm:$0xf]  ;;  %s80_s0 = smov 24   ;;  %vm68_vm4 = vcmask 130112  }
   0x5   :  { %19 = vst [vmem:[#allocation0 + $0x20] sm:$0xf] %v73_v3 }
   0x6   :  { %23 = vst [vmem:[#allocation0 + $0x18] sm:$0xf] %v74_v4 }
   0x7   :  { %27 = vst [vmem:[#allocation0 + $0x10] sm:$0xf] %v75_v5 }
   0x8   :  { %31 = vst [vmem:[#allocation0 + $0x8] sm:$0xf] %v76_v6 }
   0x9   :  { %33 = vst [vmem:[#allocation0] sm:$0xf] %v32_v7 }
   0xc   :  { %v43_v8 = vld [vmem:[#allocation0 + $0x3] ss:$8 sm:$0xf0]   ;;  %v63_v9 = vld [vmem:[#allocation0 + $0x1] ss:$8 sm:$0xf0]  }
   0xd   :  { %v53_v15 = vld [vmem:[#allocation0 + $0x2] ss:$8 sm:$0xf0]   ;;  %v35_v18 = vld [vmem:[#allocation0] ss:$8 sm:$0xf0]  }
  0x10   :  { %v41_v10 = vld [vmem:[#allocation0 + $0x3] ss:$8 sm:$0xf]   ;;  %v61_v12 = vld [vmem:[#allocation0 + $0x1] ss:$8 sm:$0xf]  }
  0x11   :  { %v45_v11 = vsel %vm36_vm0, %v43_v8, %v41_v10  ;;  %v65_v13 = vsel %vm36_vm0, %v63_v9, %v61_v12  ;;  %v51_v14 = vld [vmem:[#allocation0 + $0x2] ss:$8 sm:$0xf]   ;;  %v34_v17 = vld [vmem:[#allocation0] ss:$8 sm:$0xf]  }
  0x12   :  { %46 = vrot.lane.b32.xlu0 %v45_v11, %s80_s0  ;;  %66 = vrot.lane.b32.xlu1 %v65_v13, %s81_s22  ;;  %v55_v16 = vsel %vm36_vm0, %v53_v15, %v51_v14  ;;  %v37_v19 = vsel %vm36_vm0, %v35_v18, %v34_v17 }
  0x13   :  { %39 = vst.msk [vmem:[%s134_s1] sm:$0xff] %vm38_vm1, %v37_v19  }
  0x1a   :  { %56 = vrot.lane.b32.xlu0 %v55_v16, %s82_s23 }
  0x84   :  { %v47_v20 = vpop.permute.xlu0 %46   ;;  %v67_v21 = vpop.permute.xlu1 %66  }
  0x85   :  { %49 = vst.msk [vmem:[%s134_s1] sm:$0xff] %vm48_vm2, %v47_v20  }
  0x8c   :  { %v57_v22 = vpop.permute.xlu0 %56  }
  0x8d   :  { %59 = vst.msk [vmem:[%s134_s1] sm:$0xff] %vm58_vm3, %v57_v22  }
  0x8e   :  { %69 = vst.msk [vmem:[%s134_s1] sm:$0xff] %vm68_vm4, %v67_v21  }

// kernel: self_attention_forward.1
= control target key start
LH: loop header
LB: loop body
LE: loop exit
PB: predicated region body
PF: predicated region fallthrough
CT: control target
= control target key end

     0   :  { %15 = vsyncpa [#allocation3], 0  ;;  %s1003_s0 = inlined_call_operand.vmem [shape: f32[64,8], index: 0, kind: input, shape index: {}]   ;;  %s1004_s1 = inlined_call_operand.vmem [shape: f32[8,64], index: 1, kind: input, shape index: {}]   ;;  %s1005_s2 = inlined_call_operand.hbm [shape: f32[64,8], index: 2, kind: input, shape index: {}]   ;;  %s1006_s3 = inlined_call_operand.vmem [shape: f32[8,8], index: 3, kind: input, shape index: {}]   ;;  %s1007_s4 = inlined_call_operand.vmem [shape: f32[8,32], index: 4, kind: input, shape index: {}]   ;;  %s1008_s5 = inlined_call_operand.hbm [shape: f32[64,64], index: 5, kind: input, shape index: {}]   ;;  %s1009_s6 = inlined_call_operand.hbm [shape: f32[64,32], index: 6, kind: input, shape index: {}]   ;;  %s1010_s7 = inlined_call_operand.vmem [shape: f32[16,64], index: 7, kind: input, shape index: {}]   ;;  %s1011_s8 = inlined_call_operand.vmem [shape: f32[32,32], index: 8, kind: input, shape index: {}]   ;;  %s1012_s9 = inlined_call_operand.vmem [shape: f32[1,32], index: 9, kind: input, shape index: {}]   ;;  %s1013_s10 = inlined_call_operand.hbm [shape: f32[16,32], index: 10, kind: output, shape index: {}]  }
   0x1   :  { %16 = vsyncpa [#allocation6], 0 }
   0x2   :  { %17 = vsyncpa [#allocation4], 0  ;;  %s43_s15 = sshll.u32 %s1008_s5, 4  ;;  %s788_s16 = smov [#allocation5]   ;;  %s44_s15 = int_to_ptr.hbm [resolvable:$true] %s43_s15 }
   0x3   :  { %s45_s17 = sshll.u32 %s788_s16, 4  ;;  %s26_s20 = sshll.u32 %s1005_s2, 4  ;;  %s46_s17 = int_to_ptr.vmem [resolvable:$true] %s45_s17  ;;  %s27_s20 = int_to_ptr.hbm [resolvable:$true] %s26_s20 }
   0x4   :  { %s789_s21 = smov 128   ;;  %s790_s22 = smov 8  }
   0x5   :  { %51 = dma.hbm_to_vmem [thread:$0]  %s44_s15, 1024, %s46_s17, [#allocation6], %s789_s21, %s789_s21, %s790_s22  }
   0x6   :  { %s791_s23 = smov [#allocation2]   ;;  %s56_s5 = sshll.u32 %s1009_s6, 4  ;;  %s57_s5 = int_to_ptr.hbm [resolvable:$true] %s56_s5 }
   0x7   :  { %s28_s24 = sshll.u32 %s791_s23, 4  ;;  %s792_s2 = smov [#allocation7]   ;;  %s29_s24 = int_to_ptr.vmem [resolvable:$true] %s28_s24 }
   0x8   :  { %34 = dma.hbm_to_vmem [thread:$0]  %s27_s20, 1024, %s29_s24, [#allocation3], %s789_s21, %s789_s21, %s790_s22  }
   0x9   :  { %s58_s27 = sshll.u32 %s792_s2, 4  ;;  %s59_s27 = int_to_ptr.vmem [resolvable:$true] %s58_s27 }
   0xa   :  { %64 = dma.hbm_to_vmem [thread:$0]  %s57_s5, 1024, %s59_s27, [#allocation6], %s789_s21, %s789_s21, %s790_s22  }
   0xb   :  { %782 = dma.done.wait [#allocation3], 1024  }
   0xc   :  { %783 = vsyncadd [#allocation3], 4294966272 }
   0xd   :  { %784 = dma.done.wait [#allocation6], 2048  }
   0xe   :  { %785 = vsyncadd [#allocation6], 4294965248  ;;  %vm92_vm0 = vcmask 64512   ;;  %v91_v0 = vld [vmem:[%s1006_s3] sm:$0xff]  ;;  %v86_v2 = vld [vmem:[%s1003_s0 + $0x18] sm:$0xff]  ;;  %vm306_vm1 = vcmask 523264  }
   0xf   :  { %v83_v1 = vld [vmem:[%s1003_s0] sm:$0xff]  ;;  %132 = vmatpush.msra.mxu0 %v91_v0  ;;  %645 = vmatpush.msra.mxu2 %v91_v0  ;;  %v89_v3 = vld [vmem:[%s1003_s0 + $0x30] sm:$0xff]  ;;  %v84_v4 = vld [vmem:[%s1003_s0 + $0x8] sm:$0xff]  ;;  %vm480_vm2 = vcmask 261120   ;;  %s793_s16 = smov [#allocation8]   ;;  %s589_s20 = sshll.u32 %s1013_s10, 4  ;;  %s590_s20 = int_to_ptr.hbm [resolvable:$true] %s589_s20 }
  0x10   :  { %603 = vmatmul.msk.f32.vlgmr.msra.gmra.mxu0 %vm92_vm0, %v83_v1  ;;  %606 = vmatmul.msk.f32.vlgmr.msra.gmra.mxu2 %vm92_vm0, %v86_v2  ;;  %v87_v5 = vld [vmem:[%s1003_s0 + $0x20] sm:$0xff]  ;;  %v90_v6 = vld [vmem:[%s1003_s0 + $0x38] sm:$0xff]  ;;  %v85_v7 = vld [vmem:[%s1003_s0 + $0x10] sm:$0xff]  ;;  %s587_s17 = sshll.u32 %s793_s16, 4  ;;  %s588_s17 = int_to_ptr.vmem [resolvable:$true] %s587_s17 }
  0x11   :  { %646 = vmatpush.msra.mxu3 %v91_v0  ;;  %v88_v8 = vld [vmem:[%s1003_s0 + $0x28] sm:$0xff]  ;;  %v232_v9 = vld [vmem:[%s1004_s1] sm:$0xff]  ;;  %v160_v21 = vld [vmem:[#allocation2 + $0x10] sm:$0xff] }
  0x12   :  { %609 = vmatmul.msk.f32.vlgmr.msra.gmra.mxu3 %vm92_vm0, %v89_v3  ;;  %280 = vmatpush.msrb.mxu2 %v232_v9  ;;  %v166_v14 = vld [vmem:[%s1007_s4] sm:$0xff]  ;;  %v159_v17 = vld [vmem:[#allocation2 + $0x8] sm:$0xff]  ;;  %v161_v22 = vld [vmem:[#allocation2 + $0x18] sm:$0xff] }
  0x13   :  { %v158_v15 = vld [vmem:[#allocation2] sm:$0xff]  ;;  %206 = vmatpush.msra.mxu1 %v166_v14  ;;  %v163_v24 = vld [vmem:[#allocation2 + $0x28] sm:$0xff]  ;;  %v164_v29 = vld [vmem:[#allocation2 + $0x30] sm:$0xff] }
  0x14   :  { %611 = vmatmul.msk.f32.vlgmr.msra.gmra.mxu1 %vm92_vm0, %v158_v15  ;;  %v162_v23 = vld [vmem:[#allocation2 + $0x20] sm:$0xff]  ;;  %v234_v30 = vld [vmem:[#allocation5 + $0x8] sm:$0xff]  ;;  %v165_v34 = vld [vmem:[#allocation2 + $0x38] sm:$0xff] }
  0x15   :  { %v233_v25 = vld [vmem:[#allocation5] sm:$0xff]  ;;  %v235_v35 = vld [vmem:[#allocation5 + $0x10] sm:$0xff]  ;;  %v236_v39 = vld [vmem:[#allocation5 + $0x18] sm:$0xff] }
  0x16   :  { %v237_v43 = vld [vmem:[#allocation5 + $0x20] sm:$0xff]  ;;  %v238_v47 = vld [vmem:[#allocation5 + $0x28] sm:$0xff]  ;;  %v239_v51 = vld [vmem:[#allocation5 + $0x30] sm:$0xff] }
  0x17   :  { %v240_v55 = vld [vmem:[#allocation5 + $0x38] sm:$0xff] }
  0x18   :  { %604 = vmatmul.msk.f32.gmra.mxu0 %vm92_vm0, %v84_v4  ;;  %607 = vmatmul.msk.f32.gmra.mxu2 %vm92_vm0, %v87_v5 }
  0x1a   :  { %610 = vmatmul.msk.f32.gmra.mxu3 %vm92_vm0, %v90_v6 }
  0x1c   :  { %612 = vmatmul.msk.f32.gmra.mxu1 %vm92_vm0, %v159_v17 }
  0x20   :  { %605 = vmatmul.msk.f32.gmra.mxu0 %vm92_vm0, %v85_v7  ;;  %608 = vmatmul.msk.f32.gmra.mxu2 %vm92_vm0, %v88_v8 }
  0x24   :  { %613 = vmatmul.msk.f32.gmra.mxu1 %vm92_vm0, %v160_v21 }
  0x2c   :  { %614 = vmatmul.msk.f32.gmra.mxu1 %vm92_vm0, %v161_v22 }
  0x34   :  { %615 = vmatmul.msk.f32.gmra.mxu1 %vm92_vm0, %v162_v23 }
  0x3c   :  { %616 = vmatmul.msk.f32.gmra.mxu1 %vm92_vm0, %v163_v24 }
  0x44   :  { %617 = vmatmul.msk.f32.gmra.mxu1 %vm92_vm0, %v164_v29 }
  0x4c   :  { %618 = vmatmul.msk.f32.gmra.mxu1 %vm92_vm0, %v165_v34 }
  0x8d   :  { %v134_v10 = vpop.f32.mrf.mxu0 }
  0x8e   :  { %619 = vmatmul.msk.f32.vlgmr.msrb.gmra.mxu2 %vm92_vm0, %v134_v10 }
  0x91   :  { %v208_v59 = vpop.f32.mrf.mxu1 }
  0x93   :  { %v143_v13 = vpop.f32.mrf.mxu2 }
  0x95   :  { %v137_v11 = vpop.f32.mrf.mxu0  ;;  %v152_v19 = vpop.f32.mrf.mxu3 }
  0x96   :  { %620 = vmatmul.msk.f32.gmra.mxu2 %vm92_vm0, %v137_v11 }
  0x99   :  { %v211_v60 = vpop.f32.mrf.mxu1 }
  0x9b   :  { %v146_v16 = vpop.f32.mrf.mxu2 }
  0x9d   :  { %v140_v12 = vpop.f32.mrf.mxu0  ;;  %v155_v20 = vpop.f32.mrf.mxu3 }
  0x9e   :  { %621 = vmatmul.msk.f32.gmra.mxu2 %vm92_vm0, %v140_v12 }
  0xa1   :  { %v214_v61 = vpop.f32.mrf.mxu1 }
  0xa3   :  { %v149_v18 = vpop.f32.mrf.mxu2 }
  0xa6   :  { %622 = vmatmul.msk.f32.gmra.mxu2 %vm92_vm0, %v143_v13 }
  0xa9   :  { %v217_v62 = vpop.f32.mrf.mxu1 }
  0xae   :  { %623 = vmatmul.msk.f32.gmra.mxu2 %vm92_vm0, %v146_v16 }
  0xb1   :  { %v220_v63 = vpop.f32.mrf.mxu1 }
  0xb6   :  { %624 = vmatmul.msk.f32.gmra.mxu2 %vm92_vm0, %v149_v18 }
  0xb9   :  { %v223_v3 = vpop.f32.mrf.mxu1 }
  0xbe   :  { %625 = vmatmul.msk.f32.gmra.mxu2 %vm92_vm0, %v152_v19 }
  0xc1   :  { %v226_v9 = vpop.f32.mrf.mxu1 }
  0xc6   :  { %626 = vmatmul.msk.f32.gmra.mxu2 %vm92_vm0, %v155_v20 }
  0xc9   :  { %v229_v15 = vpop.f32.mrf.mxu1 }
  0xca   :  { %427 = vmatpush.msrb.mxu3 %v229_v15 }
  0xcc   :  { %428 = vmatpush.msrb.mxu3 %v226_v9 }
  0xce   :  { %429 = vmatpush.msrb.mxu3 %v223_v3 }
  0xd0   :  { %430 = vmatpush.msrb.mxu3 %v220_v63 }
  0xd2   :  { %431 = vmatpush.msrb.mxu3 %v217_v62 }
  0xd4   :  { %432 = vmatpush.msrb.mxu3 %v214_v61 }
  0xd6   :  { %433 = vmatpush.msrb.mxu3 %v211_v60 }
  0xd8   :  { %434 = vmatpush.msrb.mxu3 %v208_v59 }
 0x111   :  { %v282_v26 = vpop.f32.mrf.mxu2 }
 0x112   :  { %v283_v27 = vadd.f32 %v282_v26, %v233_v25 }
 0x114   :  { %v307_v28 = vsel %vm306_vm1, %v283_v27, -inf }
 0x115   :  { %308 = vmax.xlane.f32.xlu0 %v307_v28 }
 0x119   :  { %v285_v31 = vpop.f32.mrf.mxu2 }
 0x11a   :  { %v286_v32 = vadd.f32 %v285_v31, %v234_v30 }
 0x11c   :  { %v310_v33 = vsel %vm306_vm1, %v286_v32, -inf }
 0x11d   :  { %311 = vmax.xlane.f32.xlu0 %v310_v33 }
 0x121   :  { %v288_v36 = vpop.f32.mrf.mxu2 }
 0x122   :  { %v289_v37 = vadd.f32 %v288_v36, %v235_v35 }
 0x124   :  { %v313_v38 = vsel %vm306_vm1, %v289_v37, -inf }
 0x125   :  { %314 = vmax.xlane.f32.xlu1 %v313_v38 }
 0x129   :  { %v291_v40 = vpop.f32.mrf.mxu2 }
 0x12a   :  { %v292_v41 = vadd.f32 %v291_v40, %v236_v39 }
 0x12c   :  { %v316_v42 = vsel %vm306_vm1, %v292_v41, -inf }
 0x12d   :  { %317 = vmax.xlane.f32.xlu1 %v316_v42 }
 0x131   :  { %v294_v44 = vpop.f32.mrf.mxu2 }
 0x132   :  { %v295_v45 = vadd.f32 %v294_v44, %v237_v43 }
 0x134   :  { %v319_v46 = vsel %vm306_vm1, %v295_v45, -inf }
 0x135   :  { %320 = vmax.xlane.f32.xlu2 %v319_v46 }
 0x139   :  { %v297_v48 = vpop.f32.mrf.mxu2 }
 0x13a   :  { %v929_v49 = vadd.f32 %v297_v48, %v238_v47 }
 0x13c   :  { %v322_v50 = vsel %vm306_vm1, %v929_v49, -inf }
 0x13d   :  { %323 = vmax.xlane.f32.xlu2 %v322_v50 }
 0x141   :  { %v300_v52 = vpop.f32.mrf.mxu2 }
 0x142   :  { %v933_v53 = vadd.f32 %v300_v52, %v239_v51 }
 0x144   :  { %v325_v54 = vsel %vm306_vm1, %v933_v53, -inf }
 0x145   :  { %326 = vmax.xlane.f32.xlu0 %v325_v54 }
 0x149   :  { %v303_v56 = vpop.f32.mrf.mxu2 }
 0x14a   :  { %v937_v57 = vadd.f32 %v303_v56, %v240_v55  ;;  %v479_v56 = vld [vmem:[%s1011_s8 + $0x18] sm:$0xff] }
 0x14b   :  { %517 = vmatpush.msrb.mxu0 %v479_v56 }
 0x14c   :  { %v328_v58 = vsel %vm306_vm1, %v937_v57, -inf }
 0x14d   :  { %329 = vmax.xlane.f32.xlu2 %v328_v58 }
 0x188   :  { %v309_v0 = vpop.xlane.xlu0 %308 }
 0x189   :  { %v331_v1 = vsub.f32 %v283_v27, %v309_v0 }
 0x18b   :  { %v339_v2 = vmul.f32 1.442695, %v331_v1 }
 0x18d   :  { %654 = vpow2.f32 %v339_v2 }
 0x190   :  { %v312_v4 = vpop.xlane.xlu0 %311 }
 0x191   :  { %v332_v5 = vsub.f32 %v286_v32, %v312_v4 }
 0x193   :  { %v941_v6 = vpop.eup %654  ;;  %v341_v7 = vmul.f32 1.442695, %v332_v5  ;;  %v477_v5 = vld [vmem:[%s1011_s8 + $0x8] sm:$0xff] }
 0x194   :  { %v355_v8 = vsel %vm306_vm1, %v941_v6, 0.0 }
 0x195   :  { %656 = vpow2.f32 %v341_v7  ;;  %356 = vadd.xlane.f32.xlu1 %v355_v8  ;;  %v460_v7 = vld [vmem:[#allocation7] sm:$0xff] }
 0x198   :  { %v315_v10 = vpop.xlane.xlu1 %314 }
 0x199   :  { %v333_v11 = vsub.f32 %v289_v37, %v315_v10  ;;  %v461_v10 = vld [vmem:[#allocation7 + $0x8] sm:$0xff] }
 0x19b   :  { %v657_v12 = vpop.eup %656  ;;  %v343_v13 = vmul.f32 1.442695, %v333_v11 }
 0x19c   :  { %v358_v14 = vsel %vm306_vm1, %v657_v12, 0.0 }
 0x19d   :  { %658 = vpow2.f32 %v343_v13  ;;  %359 = vadd.xlane.f32.xlu0 %v358_v14  ;;  %v462_v13 = vld [vmem:[#allocation7 + $0x10] sm:$0xff] }
 0x1a0   :  { %v318_v16 = vpop.xlane.xlu1 %317 }
 0x1a1   :  { %v334_v17 = vsub.f32 %v292_v41, %v318_v16  ;;  %v463_v16 = vld [vmem:[#allocation7 + $0x18] sm:$0xff] }
 0x1a3   :  { %v659_v18 = vpop.eup %658  ;;  %v345_v19 = vmul.f32 1.442695, %v334_v17 }
 0x1a4   :  { %v361_v20 = vsel %vm306_vm1, %v659_v18, 0.0 }
 0x1a5   :  { %660 = vpow2.f32 %v345_v19  ;;  %362 = vadd.xlane.f32.xlu1 %v361_v20  ;;  %v464_v19 = vld [vmem:[#allocation7 + $0x20] sm:$0xff] }
 0x1a8   :  { %v321_v21 = vpop.xlane.xlu2 %320 }
 0x1a9   :  { %v335_v22 = vsub.f32 %v295_v45, %v321_v21 }
 0x1ab   :  { %v661_v23 = vpop.eup %660  ;;  %v347_v24 = vmul.f32 1.442695, %v335_v22  ;;  %v465_v22 = vld [vmem:[#allocation7 + $0x28] sm:$0xff] }
 0x1ac   :  { %v364_v25 = vsel %vm306_vm1, %v661_v23, 0.0 }
 0x1ad   :  { %662 = vpow2.f32 %v347_v24  ;;  %365 = vadd.xlane.f32.xlu2 %v364_v25  ;;  %v466_v25 = vld [vmem:[#allocation7 + $0x30] sm:$0xff] }
 0x1b0   :  { %v324_v26 = vpop.xlane.xlu2 %323 }
 0x1b1   :  { %v336_v27 = vsub.f32 %v929_v49, %v324_v26 }
 0x1b3   :  { %v663_v28 = vpop.eup %662  ;;  %v349_v29 = vmul.f32 1.442695, %v336_v27 }
 0x1b4   :  { %v367_v30 = vsel %vm306_vm1, %v663_v28, 0.0 }
 0x1b5   :  { %664 = vpow2.f32 %v349_v29  ;;  %368 = vadd.xlane.f32.xlu0 %v367_v30 }
 0x1b8   :  { %v327_v31 = vpop.xlane.xlu0 %326 }
 0x1b9   :  { %v337_v32 = vsub.f32 %v933_v53, %v327_v31 }
 0x1bb   :  { %v665_v33 = vpop.eup %664  ;;  %v351_v34 = vmul.f32 1.442695, %v337_v32 }
 0x1bc   :  { %v370_v35 = vsel %vm306_vm1, %v665_v33, 0.0 }
 0x1bd   :  { %666 = vpow2.f32 %v351_v34  ;;  %371 = vadd.xlane.f32.xlu1 %v370_v35 }
 0x1c0   :  { %v330_v36 = vpop.xlane.xlu2 %329 }
 0x1c1   :  { %v338_v37 = vsub.f32 %v937_v57, %v330_v36  ;;  %v478_v57 = vld [vmem:[%s1011_s8 + $0x10] sm:$0xff] }
 0x1c2   :  { %518 = vmatpush.msrb.mxu0 %v478_v57 }
 0x1c3   :  { %v667_v38 = vpop.eup %666  ;;  %v353_v39 = vmul.f32 1.442695, %v338_v37 }
 0x1c4   :  { %v373_v40 = vsel %vm306_vm1, %v667_v38, 0.0  ;;  %519 = vmatpush.msrb.mxu0 %v477_v5 }
 0x1c5   :  { %668 = vpow2.f32 %v353_v39  ;;  %374 = vadd.xlane.f32.xlu2 %v373_v40  ;;  %v546_v39 = vld [vmem:[%s1010_s7] sm:$0xff]  ;;  %v547_v40 = vld [vmem:[%s1010_s7 + $0x8] sm:$0xff] }
 0x1cb   :  { %v669_v41 = vpop.eup %668 }
 0x1cc   :  { %v376_v42 = vsel %vm306_vm1, %v669_v41, 0.0 }
 0x1cd   :  { %377 = vadd.xlane.f32.xlu0 %v376_v42 }
 0x208   :  { %v357_v43 = vpop.xlane.xlu1 %356 }
 0x209   :  { %670 = vrcp.f32 %v357_v43 }
 0x20f   :  { %v671_v44 = vpop.eup %670 }
 0x210   :  { %v360_v45 = vpop.xlane.xlu0 %359  ;;  %v387_v46 = vmul.f32 %v671_v44, %v941_v6  ;;  %v476_v6 = vld [vmem:[%s1011_s8] sm:$0xff] }
 0x211   :  { %672 = vrcp.f32 %v360_v45  ;;  %520 = vmatpush.msrb.mxu0 %v476_v6 }
 0x212   :  { %627 = vmatmul.msk.f32.vlgmr.msrb.gmra.mxu3 %vm306_vm1, %v387_v46 }
 0x217   :  { %v673_v47 = vpop.eup %672 }
 0x218   :  { %v363_v48 = vpop.xlane.xlu1 %362  ;;  %v388_v49 = vmul.f32 %v673_v47, %v657_v12 }
 0x219   :  { %674 = vrcp.f32 %v363_v48 }
 0x21a   :  { %628 = vmatmul.msk.f32.gmra.mxu3 %vm306_vm1, %v388_v49 }
 0x21f   :  { %v675_v50 = vpop.eup %674 }
 0x220   :  { %v366_v51 = vpop.xlane.xlu2 %365  ;;  %v389_v52 = vmul.f32 %v675_v50, %v659_v18 }
 0x221   :  { %676 = vrcp.f32 %v366_v51 }
 0x222   :  { %629 = vmatmul.msk.f32.gmra.mxu3 %vm306_vm1, %v389_v52 }
 0x227   :  { %v677_v53 = vpop.eup %676 }
 0x228   :  { %v369_v54 = vpop.xlane.xlu0 %368  ;;  %v390_v55 = vmul.f32 %v677_v53, %v661_v23 }
 0x229   :  { %678 = vrcp.f32 %v369_v54 }
 0x22a   :  { %630 = vmatmul.msk.f32.gmra.mxu3 %vm306_vm1, %v390_v55 }
 0x22f   :  { %v679_v58 = vpop.eup %678 }
 0x230   :  { %v372_v59 = vpop.xlane.xlu1 %371  ;;  %v391_v60 = vmul.f32 %v679_v58, %v663_v28  ;;  %v467_v28 = vld [vmem:[#allocation7 + $0x38] sm:$0xff] }
 0x231   :  { %680 = vrcp.f32 %v372_v59 }
 0x232   :  { %631 = vmatmul.msk.f32.gmra.mxu3 %vm306_vm1, %v391_v60 }
 0x237   :  { %v681_v61 = vpop.eup %680 }
 0x238   :  { %v375_v62 = vpop.xlane.xlu2 %374  ;;  %v392_v63 = vmul.f32 %v681_v61, %v665_v33 }
 0x239   :  { %682 = vrcp.f32 %v375_v62 }
 0x23a   :  { %632 = vmatmul.msk.f32.gmra.mxu3 %vm306_vm1, %v392_v63 }
 0x23f   :  { %v683_v0 = vpop.eup %682 }
 0x240   :  { %v378_v1 = vpop.xlane.xlu0 %377  ;;  %v393_v2 = vmul.f32 %v683_v0, %v667_v38 }
 0x241   :  { %684 = vrcp.f32 %v378_v1 }
 0x242   :  { %633 = vmatmul.msk.f32.gmra.mxu3 %vm306_vm1, %v393_v2 }
 0x247   :  { %v685_v3 = vpop.eup %684 }
 0x248   :  { %v394_v4 = vmul.f32 %v685_v3, %v669_v41  ;;  %v653_v41 = vld [vmem:[%s1012_s9] ss:$0 sm:$0xff] }
 0x24a   :  { %634 = vmatmul.msk.f32.gmra.mxu3 %vm306_vm1, %v394_v4 }
 0x295   :  { %v436_v8 = vpop.f32.mrf.mxu3 }
 0x296   :  { %v468_v9 = vmul.f32 %v460_v7, %v436_v8 }
 0x298   :  { %635 = vmatmul.msk.f32.vlgmr.msrb.gmra.mxu0 %vm480_vm2, %v468_v9 }
 0x29d   :  { %v439_v11 = vpop.f32.mrf.mxu3 }
 0x29e   :  { %v469_v12 = vmul.f32 %v461_v10, %v439_v11 }
 0x2a0   :  { %636 = vmatmul.msk.f32.gmra.mxu0 %vm480_vm2, %v469_v12 }
 0x2a5   :  { %v442_v14 = vpop.f32.mrf.mxu3 }
 0x2a6   :  { %v470_v15 = vmul.f32 %v462_v13, %v442_v14 }
 0x2a8   :  { %637 = vmatmul.msk.f32.gmra.mxu0 %vm480_vm2, %v470_v15 }
 0x2ad   :  { %v445_v17 = vpop.f32.mrf.mxu3 }
 0x2ae   :  { %v471_v18 = vmul.f32 %v463_v16, %v445_v17 }
 0x2b0   :  { %638 = vmatmul.msk.f32.gmra.mxu0 %vm480_vm2, %v471_v18 }
 0x2b5   :  { %v448_v20 = vpop.f32.mrf.mxu3 }
 0x2b6   :  { %v472_v21 = vmul.f32 %v464_v19, %v448_v20 }
 0x2b8   :  { %639 = vmatmul.msk.f32.gmra.mxu0 %vm480_vm2, %v472_v21 }
 0x2bd   :  { %v451_v23 = vpop.f32.mrf.mxu3 }
 0x2be   :  { %v473_v24 = vmul.f32 %v465_v22, %v451_v23 }
 0x2c0   :  { %640 = vmatmul.msk.f32.gmra.mxu0 %vm480_vm2, %v473_v24 }
 0x2c5   :  { %v454_v26 = vpop.f32.mrf.mxu3 }
 0x2c6   :  { %v474_v27 = vmul.f32 %v466_v25, %v454_v26 }
 0x2c8   :  { %641 = vmatmul.msk.f32.gmra.mxu0 %vm480_vm2, %v474_v27 }
 0x2cd   :  { %v457_v29 = vpop.f32.mrf.mxu3 }
 0x2ce   :  { %v475_v30 = vmul.f32 %v467_v28, %v457_v29 }
 0x2d0   :  { %642 = vmatmul.msk.f32.gmra.mxu0 %vm480_vm2, %v475_v30 }
 0x315   :  { %v522_v31 = vpop.f32.mrf.mxu0 }
 0x31d   :  { %v525_v32 = vpop.f32.mrf.mxu0 }
 0x325   :  { %v528_v33 = vpop.f32.mrf.mxu0 }
 0x32d   :  { %v531_v34 = vpop.f32.mrf.mxu0 }
 0x335   :  { %v534_v35 = vpop.f32.mrf.mxu0 }
 0x33d   :  { %v537_v36 = vpop.f32.mrf.mxu0 }
 0x345   :  { %v540_v37 = vpop.f32.mrf.mxu0 }
 0x34d   :  { %v543_v38 = vpop.f32.mrf.mxu0 }
 0x34e   :  { %566 = vmatpush.msrb.mxu1 %v543_v38 }
 0x350   :  { %567 = vmatpush.msrb.mxu1 %v540_v37 }
 0x352   :  { %568 = vmatpush.msrb.mxu1 %v537_v36 }
 0x354   :  { %569 = vmatpush.msrb.mxu1 %v534_v35 }
 0x356   :  { %570 = vmatpush.msrb.mxu1 %v531_v34 }
 0x358   :  { %571 = vmatpush.msrb.mxu1 %v528_v33 }
 0x35a   :  { %572 = vmatpush.msrb.mxu1 %v525_v32 }
 0x35c   :  { %573 = vmatpush.msrb.mxu1 %v522_v31 }
 0x35d   :  { %643 = vmatmul.msk.f32.vlgmr.msrb.gmra.mxu1 %vm306_vm1, %v546_v39 }
 0x365   :  { %644 = vmatmul.msk.f32.gmra.mxu1 %vm306_vm1, %v547_v40 }
 0x3da   :  { %v575_v42 = vpop.f32.mrf.mxu1 }
 0x3db   :  { %v576_v43 = vadd.f32 %v653_v41, %v575_v42 }
 0x3dd   :  { %581 = vst.msk [vmem:[#allocation8] sm:$0xff] %vm480_vm2, %v576_v43 }
 0x3e2   :  { %v578_v44 = vpop.f32.mrf.mxu1 }
 0x3e3   :  { %v579_v45 = vadd.f32 %v653_v41, %v578_v44 }
 0x3e5   :  { %582 = vst.msk [vmem:[#allocation8 + $0x8] sm:$0xff] %vm480_vm2, %v579_v45 }
 0x3e6   :  { %595 = dma.vmem_to_hbm [thread:$0]  %s588_s17, 256, %s590_s20, [#allocation4], %s789_s21, %s789_s21, %s790_s22  }
 0x3e7   :  { %786 = dma.done.wait [#allocation4], 256  }
 0x3e8   :  { %787 = vsyncadd [#allocation4], 4294967040 }
 0x3e9   :  { %600 = vsyncpa [#allocation3], 1 }
 0x3ea   :  { %601 = vsyncpa [#allocation6], 1 }
 0x3eb   :  { %602 = vsyncpa [#allocation4], 1 }

</bundles_post_ra>
